<compile_context>
chip_gen: v6e
topology: v6e:2x2x1
jax: 0.10.0
libtpu: 0.0.40
codegen_flags: <defaults>
</compile_context>

<pallas_src>
import jax
import jax.numpy as jnp
from jax.experimental import pallas as pl
from jax.experimental.pallas import tpu as pltpu

IN_FEATURES = 1 * 32 * 64       # 2048
OUT_FEATURES = 100
N_PAD = 128                     # lane-dense padded class dim
NEG_BIG = jnp.float32(-1e30)    # padded-lane bias (acts as -inf in the logsumexp)

_TM_MAX = 1024                  # f32 x tile double-buffered: 2 * 1024 * 2048 * 4 = 16 MiB
_VMEM_LIMIT_BYTES = 48 * 1024 * 1024   # > worst-case ~19 MiB footprint, < 64 MiB (v7x per-TC)


def _round_up(v, m):
    return ((v + m - 1) // m) * m


def _pick_tm(batch):
    """Batch tile size.

    * batch <= 512: one full-extent block (legal for any batch, no padding needed).
    * 512 < batch <= 2*_TM_MAX: split into exactly two tiles so both v7x TensorCores
      get work under dimension_semantics=("parallel",).
    * larger: cap at _TM_MAX; double-buffered footprint stays ~18 MiB, well under
      v7x's 64 MiB per-core VMEM and v5e/v6e's 128 MiB.
    """
    if batch <= 512:
        return batch
    if batch <= 2 * _TM_MAX:
        return _round_up(pl.cdiv(batch, 2), 8)
    return _TM_MAX


def _one_layer_kernel(x_ref, w_ref, b_ref, o_ref):
    # x_ref: [TM, 2048]  w_ref: [2048, 128]  b_ref: [1, 128]  o_ref: [TM, 128]
    logits = jnp.dot(x_ref[...], w_ref[...],
                     preferred_element_type=jnp.float32) + b_ref[...]
    # Numerically stable log_softmax over the class axis. Padded lanes carry a
    # -1e30 bias and zero weight columns, so they never win the max and exp()
    # underflows them to 0. Garbage rows of a partial last batch block are
    # harmless: their stores are masked on write-back.
    m = jnp.max(logits, axis=-1, keepdims=True)
    shifted = logits - m
    lse = jnp.log(jnp.sum(jnp.exp(shifted), axis=-1, keepdims=True))
    o_ref[...] = (shifted - lse).astype(o_ref.dtype)


def prepare_params(w, b, param_dtype=jnp.float32):
    """One-time parameter prep (do NOT call per forward pass).

    w: [100, 2048] f32 (PyTorch Linear layout), b: [100] f32
    Returns (w_pad: [2048, 128], b_pad: [1, 128]) in `param_dtype`, with padded
    class lanes given zero weights and a -1e30 bias.
    Use param_dtype=jnp.bfloat16 to halve the weight DMA (small-batch serving)
    at ~1e-2-level numeric deviation; default f32 preserves exact numerics.
    """
    w_t = jnp.asarray(w, jnp.float32).T                        # [2048, 100]
    w_pad = jnp.zeros((IN_FEATURES, N_PAD), jnp.float32)
    w_pad = w_pad.at[:, :OUT_FEATURES].set(w_t)
    b_pad = jnp.full((1, N_PAD), NEG_BIG, jnp.float32)
    b_pad = b_pad.at[0, :OUT_FEATURES].set(jnp.asarray(b, jnp.float32))
    return w_pad.astype(param_dtype), b_pad.astype(param_dtype)


def one_layer_model(x, w_pad, b_pad):
    """Forward pass.

    x: [B, 1, 32, 64] (or already-flattened [B, 2048]) f32
    w_pad, b_pad: outputs of prepare_params()
    Returns [B, 100] f32 log-probabilities.
    """
    B = x.shape[0]
    x_flat = x.reshape(B, -1)                      # == torch x.view(B, -1)
    assert x_flat.shape[1] == IN_FEATURES

    tm = _pick_tm(B)
    grid = (pl.cdiv(B, tm),)

    cost = pl.CostEstimate(
        flops=2 * B * IN_FEATURES * N_PAD,
        transcendentals=B * (N_PAD + 1),
        bytes_accessed=(x_flat.dtype.itemsize * B * IN_FEATURES        # x
                        + w_pad.dtype.itemsize * IN_FEATURES * N_PAD   # weight (once)
                        + b_pad.dtype.itemsize * N_PAD                 # bias
                        + 4 * B * N_PAD),                              # out (f32)
    )

    out_pad = pl.pallas_call(
        _one_layer_kernel,
        out_shape=jax.ShapeDtypeStruct((B, N_PAD), jnp.float32),
        grid_spec=pltpu.PrefetchScalarGridSpec(
            num_scalar_prefetch=0,
            grid=grid,
            in_specs=[
                # x: tiled over the batch, pipelined (partial last block handled by Pallas).
                pl.BlockSpec((tm, IN_FEATURES), lambda i: (i, 0)),
                # weight / bias: constant index_map -> DMA'd once, VMEM-resident.
                pl.BlockSpec((IN_FEATURES, N_PAD), lambda i: (0, 0)),
                pl.BlockSpec((1, N_PAD), lambda i: (0, 0)),
            ],
            out_specs=pl.BlockSpec((tm, N_PAD), lambda i: (i, 0)),
        ),
        compiler_params=pltpu.CompilerParams(
            dimension_semantics=("parallel",),
            vmem_limit_bytes=_VMEM_LIMIT_BYTES,
        ),
        cost_estimate=cost,
    )(x_flat, w_pad, b_pad)

    # Strip class padding (cheap wrapper-side slice); batch is never padded anymore.
    return out_pad[:, :OUT_FEATURES]


if __name__ == "__main__":
    key = jax.random.PRNGKey(0)
    kx, kw, kb = jax.random.split(key, 3)

    B = 4
    # NCHW [B, 1, 32, 64] input, as the module expects before x.view(B, -1).
    x = jax.random.normal(kx, (B, 1, 32, 64), dtype=jnp.float32)

    # nn.Linear-style uniform(-1/sqrt(fan_in), 1/sqrt(fan_in)) init.
    bound = 1.0 / (IN_FEATURES ** 0.5)
    w = jax.random.uniform(kw, (OUT_FEATURES, IN_FEATURES),
                           minval=-bound, maxval=bound, dtype=jnp.float32)
    b = jax.random.uniform(kb, (OUT_FEATURES,),
                           minval=-bound, maxval=bound, dtype=jnp.float32)

    # Parameter prep happens once (outside the per-call path). Default f32 keeps
    # exact parity with the PyTorch module.
    w_pad, b_pad = prepare_params(w, b)

    out = one_layer_model(x, w_pad, b_pad)
    jax.block_until_ready(out)

    # Reference check in plain JAX.
    ref = jax.nn.log_softmax(x.reshape(B, -1) @ w.T + b, axis=1)
    assert out.shape == (B, OUT_FEATURES)
    assert jnp.allclose(out, ref, atol=1e-5, rtol=1e-5)

    print("KERNEL_OK")
</pallas_src>

<mosaic_0001>
module attributes {stable_mosaic.version = 11 : i64} {
  func.func @_one_layer_kernel(%arg0: i32, %arg1: memref<4x2048xf32, #tpu.memory_space<vmem>>, %arg2: memref<2048x128xf32, #tpu.memory_space<vmem>>, %arg3: memref<1x128xf32, #tpu.memory_space<vmem>>, %arg4: memref<4x128xf32, #tpu.memory_space<vmem>>) attributes {dimension_semantics = [#tpu.dimension_semantics<parallel>], iteration_bounds = array<i64: 1>, scalar_prefetch = 0 : i64, scratch_operands = 0 : i64, tpu.core_type = #tpu.core_type<tc>, window_params = [{transform_indices = @transform_0, window_bounds = array<i64: 4, 2048>}, {pipeline_mode = #tpu.pipeline_mode<synchronous>, transform_indices = @transform_1, window_bounds = array<i64: 2048, 128>}, {pipeline_mode = #tpu.pipeline_mode<synchronous>, transform_indices = @transform_2, window_bounds = array<i64: 1, 128>}, {transform_indices = @transform_3, window_bounds = array<i64: 4, 128>}]} {
    %c0 = arith.constant 0 : index
    %c0_0 = arith.constant 0 : index
    %0 = vector.load %arg1[%c0, %c0_0] : memref<4x2048xf32, #tpu.memory_space<vmem>>, vector<4x2048xf32>
    %c0_1 = arith.constant 0 : index
    %c0_2 = arith.constant 0 : index
    %1 = vector.load %arg2[%c0_1, %c0_2] : memref<2048x128xf32, #tpu.memory_space<vmem>>, vector<2048x128xf32>
    %cst = arith.constant dense<0.000000e+00> : vector<4x128xf32>
    %2 = tpu.matmul %0, %1, %cst {dimension_numbers = #tpu.dot_dimension_numbers<[1], [0], [0], [1], [0, 0, 1, 1], [], []>} : vector<4x2048xf32>, vector<2048x128xf32>, vector<4x128xf32> -> vector<4x128xf32>
    %c0_3 = arith.constant 0 : index
    %c0_4 = arith.constant 0 : index
    %3 = vector.load %arg3[%c0_3, %c0_4] : memref<1x128xf32, #tpu.memory_space<vmem>>, vector<1x128xf32>
    %4 = vector.broadcast %3 : vector<1x128xf32> to vector<4x128xf32>
    %5 = arith.addf %2, %4 : vector<4x128xf32>
    %cst_5 = arith.constant dense<0xFF800000> : vector<4xf32>
    %6 = vector.multi_reduction <maximumf>, %5, %cst_5 [1] : vector<4x128xf32> to vector<4xf32>
    %7 = vector.shape_cast %6 : vector<4xf32> to vector<4x1xf32>
    %8 = vector.broadcast %7 : vector<4x1xf32> to vector<4x128xf32>
    %9 = arith.subf %5, %8 : vector<4x128xf32>
    %10 = math.exp %9 : vector<4x128xf32>
    %cst_6 = arith.constant dense<0.000000e+00> : vector<4xf32>
    %11 = vector.multi_reduction <add>, %10, %cst_6 [1] : vector<4x128xf32> to vector<4xf32>
    %12 = vector.shape_cast %11 : vector<4xf32> to vector<4x1xf32>
    %13 = math.log %12 : vector<4x1xf32>
    %14 = vector.broadcast %13 : vector<4x1xf32> to vector<4x128xf32>
    %15 = arith.subf %9, %14 : vector<4x128xf32>
    %c0_7 = arith.constant 0 : index
    %c0_8 = arith.constant 0 : index
    %16 = vector.load %arg4[%c0_7, %c0_8] : memref<4x128xf32, #tpu.memory_space<vmem>>, vector<4x128xf32>
    tpu.vector_store %arg4[%c0_7, %c0_8], %15 {strides = array<i32>} : memref<4x128xf32, #tpu.memory_space<vmem>>, vector<4x128xf32>,
    return
  }
  func.func @transform_0(%arg0: i32) -> (i32, i32) {
    %c0_i32 = arith.constant 0 : i32
    %c0_i32_0 = arith.constant 0 : i32
    return %arg0, %c0_i32 : i32, i32
  }
  func.func @transform_1(%arg0: i32) -> (i32, i32) {
    %c0_i32 = arith.constant 0 : i32
    %c0_i32_0 = arith.constant 0 : i32
    %c0_i32_1 = arith.constant 0 : i32
    return %c0_i32, %c0_i32_0 : i32, i32
  }
  func.func @transform_2(%arg0: i32) -> (i32, i32) {
    %c0_i32 = arith.constant 0 : i32
    %c0_i32_0 = arith.constant 0 : i32
    %c0_i32_1 = arith.constant 0 : i32
    return %c0_i32, %c0_i32_0 : i32, i32
  }
  func.func @transform_3(%arg0: i32) -> (i32, i32) {
    %c0_i32 = arith.constant 0 : i32
    %c0_i32_0 = arith.constant 0 : i32
    return %arg0, %c0_i32 : i32, i32
  }
}

</mosaic_0001>

<bundles_post_ra>
// kernel: tpu_custom_call.1
= control target key start
LH: loop header
LB: loop body
LE: loop exit
PB: predicated region body
PF: predicated region fallthrough
CT: control target
= control target key end

     0   :  { %8 = vsyncpa [#allocation3], 0  ;;  %s1327_s0 = inlined_call_operand.hbm [shape: f32[4,2048], index: 0, kind: input, shape index: {}]   ;;  %s1328_s1 = inlined_call_operand.hbm [shape: f32[2048,128], index: 1, kind: input, shape index: {}]   ;;  %s1329_s2 = inlined_call_operand.vmem [shape: f32[1,128], index: 2, kind: input, shape index: {}]   ;;  %s1330_s3 = inlined_call_operand.hbm [shape: f32[4,128], index: 3, kind: output, shape index: {}]  }
   0x1   :  { %9 = vsyncpa [#allocation6], 0 }
   0x2   :  { %10 = vsyncpa [#allocation4], 0  ;;  %s1290_s12 = smov [#allocation2]   ;;  %s1291_s14 = smov [#allocation5]  }
   0x3   :  { %s17_s13 = sshll.u32 %s1290_s12, 4  ;;  %s26_s15 = sshll.u32 %s1291_s14, 4  ;;  %s18_s13 = int_to_ptr.vmem [resolvable:$true] %s17_s13  ;;  %s27_s15 = int_to_ptr.vmem [resolvable:$true] %s26_s15 }
   0x4   :  { %s1232_s16 = scalar_lea.vmem %s18_s13, 1024  ;;  %p1237_p1 = scmp.lt.s32.totalorder %s18_s13, %s18_s13 }
   0x5   :  { %p1233_p0 = scmp.ne.s32.totalorder %s18_s13, %s1232_s16  ;;  %p1238_p2 = scmp.lt.s32.totalorder %s1232_s16, %s1232_s16 }
   0x7   :  { %p1239_p3 = por %p1238_p2, %p1237_p1 }
   0x9   :  { %p1240_p4 = pnand %p1239_p3, %p1233_p0 }
   0xb   :  { %1243 = shalt.err (!%p1240_p4)
}
   0xc   :  { %20 = dma.hbm_to_vmem [thread:$0]  %s1327_s0, 1024, %s18_s13, [#allocation3]  }
   0xd   :  { %s1252_s19 = scalar_lea.vmem %s27_s15, 32768  ;;  %p1257_p6 = scmp.lt.s32.totalorder %s27_s15, %s27_s15 }
   0xe   :  { %p1253_p5 = scmp.ne.s32.totalorder %s27_s15, %s1252_s19  ;;  %p1258_p7 = scmp.lt.s32.totalorder %s1252_s19, %s1252_s19 }
  0x10   :  { %p1259_p8 = por %p1258_p7, %p1257_p6 }
  0x12   :  { %p1260_p9 = pnand %p1259_p8, %p1253_p5 }
  0x14   :  { %1263 = shalt.err (!%p1260_p9)
}
  0x15   :  { %s1292_s20 = smov 128   ;;  %s1293_s21 = smov 8  }
  0x16   :  { %32 = dma.hbm_to_vmem [thread:$0]  %s1328_s1, 32768, %s27_s15, [#allocation6], %s1292_s20, %s1292_s20, %s1293_s21  }
  0x17   :  { %1284 = dma.done.wait [#allocation3], 1024  }
  0x18   :  { %1285 = vsyncadd [#allocation3], 4294966272 }
  0x19   :  { %1286 = dma.done.wait [#allocation6], 32768  }
  0x1a   :  { %1287 = vsyncadd [#allocation6], 4294934528  ;;  %v80_v0 = vld [vmem:[#allocation5 + $0xf8] sm:$0xff]  ;;  %v79_v4 = vld [vmem:[#allocation5 + $0xf0] sm:$0xff]  ;;  %vm896_vm0 = vcmask 1043456  }
  0x1b   :  { %v112_v1 = vld [vmem:[#allocation5 + $0x1f8] sm:$0xff]  ;;  %927 = vmatprep.subr.mxu0 %v80_v0  ;;  %v111_v5 = vld [vmem:[#allocation5 + $0x1f0] sm:$0xff]  ;;  %v78_v8 = vld [vmem:[#allocation5 + $0xe8] sm:$0xff] }
  0x1c   :  { %v64_v2 = vld [vmem:[#allocation5 + $0x78] sm:$0xff]  ;;  %962 = vmatprep.subr.mxu1 %v112_v1  ;;  %v63_v6 = vld [vmem:[#allocation5 + $0x70] sm:$0xff]  ;;  %v110_v9 = vld [vmem:[#allocation5 + $0x1e8] sm:$0xff] }
  0x1d   :  { %v96_v3 = vld [vmem:[#allocation5 + $0x178] sm:$0xff]  ;;  %928 = vmatpush3.msra.mxu0 %v64_v2  ;;  %v95_v7 = vld [vmem:[#allocation5 + $0x170] sm:$0xff]  ;;  %v62_v10 = vld [vmem:[#allocation5 + $0x68] sm:$0xff] }
  0x1e   :  { %963 = vmatpush3.msra.mxu1 %v96_v3  ;;  %929 = vmatprep.subr.mxu0 %v79_v4  ;;  %v94_v11 = vld [vmem:[#allocation5 + $0x168] sm:$0xff]  ;;  %v77_v12 = vld [vmem:[#allocation5 + $0xe0] sm:$0xff]  ;;  %v76_v16 = vld [vmem:[#allocation5 + $0xd8] sm:$0xff] }
  0x1f   :  { %964 = vmatprep.subr.mxu1 %v111_v5  ;;  %930 = vmatpush3.msra.mxu0 %v63_v6  ;;  %v109_v13 = vld [vmem:[#allocation5 + $0x1e0] sm:$0xff]  ;;  %v108_v17 = vld [vmem:[#allocation5 + $0x1d8] sm:$0xff]  ;;  %v75_v20 = vld [vmem:[#allocation5 + $0xd0] sm:$0xff] }
  0x20   :  { %965 = vmatpush3.msra.mxu1 %v95_v7  ;;  %931 = vmatprep.subr.mxu0 %v78_v8  ;;  %v61_v14 = vld [vmem:[#allocation5 + $0x60] sm:$0xff]  ;;  %v60_v18 = vld [vmem:[#allocation5 + $0x58] sm:$0xff]  ;;  %v107_v21 = vld [vmem:[#allocation5 + $0x1d0] sm:$0xff] }
  0x21   :  { %966 = vmatprep.subr.mxu1 %v110_v9  ;;  %v93_v15 = vld [vmem:[#allocation5 + $0x160] sm:$0xff]  ;;  %932 = vmatpush3.msra.mxu0 %v62_v10  ;;  %v92_v19 = vld [vmem:[#allocation5 + $0x158] sm:$0xff]  ;;  %v59_v22 = vld [vmem:[#allocation5 + $0x50] sm:$0xff] }
  0x22   :  { %967 = vmatpush3.msra.mxu1 %v94_v11  ;;  %933 = vmatprep.subr.mxu0 %v77_v12  ;;  %v91_v23 = vld [vmem:[#allocation5 + $0x150] sm:$0xff]  ;;  %v74_v24 = vld [vmem:[#allocation5 + $0xc8] sm:$0xff]  ;;  %v73_v28 = vld [vmem:[#allocation5 + $0xc0] sm:$0xff] }
  0x23   :  { %968 = vmatprep.subr.mxu1 %v109_v13  ;;  %934 = vmatpush3.msra.mxu0 %v61_v14  ;;  %v106_v25 = vld [vmem:[#allocation5 + $0x1c8] sm:$0xff]  ;;  %v105_v29 = vld [vmem:[#allocation5 + $0x1c0] sm:$0xff]  ;;  %v72_v32 = vld [vmem:[#allocation5 + $0xb8] sm:$0xff] }
  0x24   :  { %969 = vmatpush3.msra.mxu1 %v93_v15  ;;  %935 = vmatprep.subr.mxu0 %v76_v16  ;;  %v58_v26 = vld [vmem:[#allocation5 + $0x48] sm:$0xff]  ;;  %v57_v30 = vld [vmem:[#allocation5 + $0x40] sm:$0xff]  ;;  %v104_v33 = vld [vmem:[#allocation5 + $0x1b8] sm:$0xff] }
  0x25   :  { %970 = vmatprep.subr.mxu1 %v108_v17  ;;  %936 = vmatpush3.msra.mxu0 %v60_v18  ;;  %v90_v27 = vld [vmem:[#allocation5 + $0x148] sm:$0xff]  ;;  %v89_v31 = vld [vmem:[#allocation5 + $0x140] sm:$0xff]  ;;  %v56_v34 = vld [vmem:[#allocation5 + $0x38] sm:$0xff] }
  0x26   :  { %971 = vmatpush3.msra.mxu1 %v92_v19  ;;  %937 = vmatprep.subr.mxu0 %v75_v20  ;;  %v88_v35 = vld [vmem:[#allocation5 + $0x138] sm:$0xff]  ;;  %v71_v36 = vld [vmem:[#allocation5 + $0xb0] sm:$0xff]  ;;  %v70_v40 = vld [vmem:[#allocation5 + $0xa8] sm:$0xff] }
  0x27   :  { %972 = vmatprep.subr.mxu1 %v107_v21  ;;  %938 = vmatpush3.msra.mxu0 %v59_v22  ;;  %v103_v37 = vld [vmem:[#allocation5 + $0x1b0] sm:$0xff]  ;;  %v102_v41 = vld [vmem:[#allocation5 + $0x1a8] sm:$0xff]  ;;  %v69_v44 = vld [vmem:[#allocation5 + $0xa0] sm:$0xff] }
  0x28   :  { %973 = vmatpush3.msra.mxu1 %v91_v23  ;;  %939 = vmatprep.subr.mxu0 %v74_v24  ;;  %v55_v38 = vld [vmem:[#allocation5 + $0x30] sm:$0xff]  ;;  %v54_v42 = vld [vmem:[#allocation5 + $0x28] sm:$0xff]  ;;  %v101_v45 = vld [vmem:[#allocation5 + $0x1a0] sm:$0xff] }
  0x29   :  { %974 = vmatprep.subr.mxu1 %v106_v25  ;;  %940 = vmatpush3.msra.mxu0 %v58_v26  ;;  %v87_v39 = vld [vmem:[#allocation5 + $0x130] sm:$0xff]  ;;  %v86_v43 = vld [vmem:[#allocation5 + $0x128] sm:$0xff]  ;;  %v53_v46 = vld [vmem:[#allocation5 + $0x20] sm:$0xff] }
  0x2a   :  { %975 = vmatpush3.msra.mxu1 %v90_v27  ;;  %941 = vmatprep.subr.mxu0 %v73_v28  ;;  %v85_v47 = vld [vmem:[#allocation5 + $0x120] sm:$0xff]  ;;  %v68_v48 = vld [vmem:[#allocation5 + $0x98] sm:$0xff]  ;;  %v67_v52 = vld [vmem:[#allocation5 + $0x90] sm:$0xff] }
  0x2b   :  { %976 = vmatprep.subr.mxu1 %v105_v29  ;;  %942 = vmatpush3.msra.mxu0 %v57_v30  ;;  %v100_v49 = vld [vmem:[#allocation5 + $0x198] sm:$0xff]  ;;  %v99_v53 = vld [vmem:[#allocation5 + $0x190] sm:$0xff]  ;;  %v41_v56 = vld [vmem:[#allocation2] sm:$0xff] }
  0x2c   :  { %977 = vmatpush3.msra.mxu1 %v89_v31  ;;  %943 = vmatprep.subr.mxu0 %v72_v32  ;;  %v52_v50 = vld [vmem:[#allocation5 + $0x18] sm:$0xff]  ;;  %v51_v54 = vld [vmem:[#allocation5 + $0x10] sm:$0xff]  ;;  %v66_v57 = vld [vmem:[#allocation5 + $0x88] sm:$0xff]  ;;  %v320_v0 = vcombine.high %v41_v56, %v41_v56 }
  0x2d   :  { %978 = vmatprep.subr.mxu1 %v104_v33  ;;  %944 = vmatpush3.msra.mxu0 %v56_v34  ;;  %v84_v51 = vld [vmem:[#allocation5 + $0x118] sm:$0xff]  ;;  %v83_v55 = vld [vmem:[#allocation5 + $0x110] sm:$0xff]  ;;  %v98_v58 = vld [vmem:[#allocation5 + $0x188] sm:$0xff] }
  0x2e   :  { %979 = vmatpush3.msra.mxu1 %v88_v35  ;;  %945 = vmatprep.subr.mxu0 %v71_v36  ;;  %v50_v59 = vld [vmem:[#allocation5 + $0x8] sm:$0xff]  ;;  %v65_v62 = vld [vmem:[#allocation5 + $0x80] sm:$0xff]  ;;  %v144_v4 = vld [vmem:[#allocation5 + $0x2f8] sm:$0xff] }
  0x2f   :  { %980 = vmatprep.subr.mxu1 %v103_v37  ;;  %946 = vmatpush3.msra.mxu0 %v55_v38  ;;  %v82_v60 = vld [vmem:[#allocation5 + $0x108] sm:$0xff]  ;;  %v97_v63 = vld [vmem:[#allocation5 + $0x180] sm:$0xff]  ;;  %v176_v5 = vld [vmem:[#allocation5 + $0x3f8] sm:$0xff] }
  0x30   :  { %981 = vmatpush3.msra.mxu1 %v87_v39  ;;  %947 = vmatprep.subr.mxu0 %v70_v40  ;;  %v42_v61 = vld [vmem:[#allocation2 + $0x8] sm:$0xff]  ;;  %v49_v1 = vld [vmem:[#allocation5] sm:$0xff]  ;;  %v128_v6 = vld [vmem:[#allocation5 + $0x278] sm:$0xff] }
  0x31   :  { %982 = vmatprep.subr.mxu1 %v102_v41  ;;  %948 = vmatpush3.msra.mxu0 %v54_v42  ;;  %v81_v2 = vld [vmem:[#allocation5 + $0x100] sm:$0xff]  ;;  %v321_v3 = vcombine.high %v42_v61, %v42_v61  ;;  %v160_v7 = vld [vmem:[#allocation5 + $0x378] sm:$0xff]  ;;  %v143_v8 = vld [vmem:[#allocation5 + $0x2f0] sm:$0xff] }
  0x32   :  { %983 = vmatpush3.msra.mxu1 %v86_v43  ;;  %949 = vmatprep.subr.mxu0 %v69_v44  ;;  %v175_v9 = vld [vmem:[#allocation5 + $0x3f0] sm:$0xff]  ;;  %v142_v12 = vld [vmem:[#allocation5 + $0x2e8] sm:$0xff]  ;;  %v141_v16 = vld [vmem:[#allocation5 + $0x2e0] sm:$0xff] }
  0x33   :  { %984 = vmatprep.subr.mxu1 %v101_v45  ;;  %950 = vmatpush3.msra.mxu0 %v53_v46  ;;  %v127_v10 = vld [vmem:[#allocation5 + $0x270] sm:$0xff]  ;;  %v174_v13 = vld [vmem:[#allocation5 + $0x3e8] sm:$0xff]  ;;  %v173_v17 = vld [vmem:[#allocation5 + $0x3e0] sm:$0xff] }
  0x34   :  { %985 = vmatpush3.msra.mxu1 %v85_v47  ;;  %951 = vmatprep.subr.mxu0 %v68_v48  ;;  %v159_v11 = vld [vmem:[#allocation5 + $0x370] sm:$0xff]  ;;  %v126_v14 = vld [vmem:[#allocation5 + $0x268] sm:$0xff]  ;;  %v125_v18 = vld [vmem:[#allocation5 + $0x260] sm:$0xff] }
  0x35   :  { %986 = vmatprep.subr.mxu1 %v100_v49  ;;  %952 = vmatpush3.msra.mxu0 %v52_v50  ;;  %v158_v15 = vld [vmem:[#allocation5 + $0x368] sm:$0xff]  ;;  %v157_v19 = vld [vmem:[#allocation5 + $0x360] sm:$0xff]  ;;  %v140_v20 = vld [vmem:[#allocation5 + $0x2d8] sm:$0xff] }
  0x36   :  { %987 = vmatpush3.msra.mxu1 %v84_v51  ;;  %953 = vmatprep.subr.mxu0 %v67_v52  ;;  %v172_v21 = vld [vmem:[#allocation5 + $0x3d8] sm:$0xff]  ;;  %v139_v24 = vld [vmem:[#allocation5 + $0x2d0] sm:$0xff]  ;;  %v138_v28 = vld [vmem:[#allocation5 + $0x2c8] sm:$0xff] }
  0x37   :  { %988 = vmatprep.subr.mxu1 %v99_v53  ;;  %954 = vmatpush3.msra.mxu0 %v51_v54  ;;  %v124_v22 = vld [vmem:[#allocation5 + $0x258] sm:$0xff]  ;;  %v171_v25 = vld [vmem:[#allocation5 + $0x3d0] sm:$0xff]  ;;  %v170_v29 = vld [vmem:[#allocation5 + $0x3c8] sm:$0xff] }
  0x38   :  { %989 = vmatpush3.msra.mxu1 %v83_v55  ;;  %955 = vmatprep.subr.mxu0 %v66_v57  ;;  %v156_v23 = vld [vmem:[#allocation5 + $0x358] sm:$0xff]  ;;  %v123_v26 = vld [vmem:[#allocation5 + $0x250] sm:$0xff]  ;;  %v122_v30 = vld [vmem:[#allocation5 + $0x248] sm:$0xff] }
  0x39   :  { %990 = vmatprep.subr.mxu1 %v98_v58  ;;  %956 = vmatpush3.msra.mxu0 %v50_v59  ;;  %v155_v27 = vld [vmem:[#allocation5 + $0x350] sm:$0xff]  ;;  %v154_v31 = vld [vmem:[#allocation5 + $0x348] sm:$0xff]  ;;  %v137_v32 = vld [vmem:[#allocation5 + $0x2c0] sm:$0xff] }
  0x3a   :  { %991 = vmatpush3.msra.mxu1 %v82_v60  ;;  %957 = vmatprep.subr.mxu0 %v65_v62  ;;  %v169_v33 = vld [vmem:[#allocation5 + $0x3c0] sm:$0xff]  ;;  %v136_v36 = vld [vmem:[#allocation5 + $0x2b8] sm:$0xff]  ;;  %v135_v40 = vld [vmem:[#allocation5 + $0x2b0] sm:$0xff] }
  0x3b   :  { %992 = vmatprep.subr.mxu1 %v97_v63  ;;  %958 = vmatpush3.msra.mxu0 %v49_v1  ;;  %v121_v34 = vld [vmem:[#allocation5 + $0x240] sm:$0xff]  ;;  %v168_v37 = vld [vmem:[#allocation5 + $0x3b8] sm:$0xff]  ;;  %v167_v41 = vld [vmem:[#allocation5 + $0x3b0] sm:$0xff] }
  0x3c   :  { %400 = vmatprep.mubr.f32.mxu0 %v320_v0  ;;  %993 = vmatpush3.msra.mxu1 %v81_v2  ;;  %v153_v35 = vld [vmem:[#allocation5 + $0x340] sm:$0xff]  ;;  %v120_v38 = vld [vmem:[#allocation5 + $0x238] sm:$0xff]  ;;  %v119_v42 = vld [vmem:[#allocation5 + $0x230] sm:$0xff] }
  0x3d   :  { %401 = vmatmul.mubr.f32.vlgmr.msra.gmra.mxu0 %v41_v56  ;;  %470 = vmatprep.mubr.f32.mxu1 %v321_v3  ;;  %v152_v39 = vld [vmem:[#allocation5 + $0x338] sm:$0xff]  ;;  %v151_v43 = vld [vmem:[#allocation5 + $0x330] sm:$0xff]  ;;  %v134_v44 = vld [vmem:[#allocation5 + $0x2a8] sm:$0xff] }
  0x3e   :  { %997 = vmatprep.subr.mxu0 %v144_v4  ;;  %1032 = vmatprep.subr.mxu1 %v176_v5  ;;  %v166_v45 = vld [vmem:[#allocation5 + $0x3a8] sm:$0xff]  ;;  %v133_v48 = vld [vmem:[#allocation5 + $0x2a0] sm:$0xff]  ;;  %v132_v52 = vld [vmem:[#allocation5 + $0x298] sm:$0xff] }
  0x3f   :  { %471 = vmatmul.mubr.f32.vlgmr.msra.gmra.mxu1 %v42_v61  ;;  %998 = vmatpush3.msra.mxu0 %v128_v6  ;;  %v118_v46 = vld [vmem:[#allocation5 + $0x228] sm:$0xff]  ;;  %v165_v49 = vld [vmem:[#allocation5 + $0x3a0] sm:$0xff]  ;;  %v164_v53 = vld [vmem:[#allocation5 + $0x398] sm:$0xff] }
  0x40   :  { %1033 = vmatpush3.msra.mxu1 %v160_v7  ;;  %999 = vmatprep.subr.mxu0 %v143_v8  ;;  %v150_v47 = vld [vmem:[#allocation5 + $0x328] sm:$0xff]  ;;  %v117_v50 = vld [vmem:[#allocation5 + $0x220] sm:$0xff]  ;;  %v116_v54 = vld [vmem:[#allocation5 + $0x218] sm:$0xff] }
  0x41   :  { %1034 = vmatprep.subr.mxu1 %v175_v9  ;;  %1000 = vmatpush3.msra.mxu0 %v127_v10  ;;  %v149_v51 = vld [vmem:[#allocation5 + $0x320] sm:$0xff]  ;;  %v148_v55 = vld [vmem:[#allocation5 + $0x318] sm:$0xff]  ;;  %v131_v56 = vld [vmem:[#allocation5 + $0x290] sm:$0xff] }
  0x42   :  { %1035 = vmatpush3.msra.mxu1 %v159_v11  ;;  %1001 = vmatprep.subr.mxu0 %v142_v12  ;;  %v163_v57 = vld [vmem:[#allocation5 + $0x390] sm:$0xff]  ;;  %v130_v61 = vld [vmem:[#allocation5 + $0x288] sm:$0xff]  ;;  %v44_v1 = vld [vmem:[#allocation2 + $0x18] sm:$0xff] }
  0x43   :  { %1036 = vmatprep.subr.mxu1 %v174_v13  ;;  %1002 = vmatpush3.msra.mxu0 %v126_v14  ;;  %v115_v58 = vld [vmem:[#allocation5 + $0x210] sm:$0xff]  ;;  %v162_v62 = vld [vmem:[#allocation5 + $0x388] sm:$0xff]  ;;  %v129_v2 = vld [vmem:[#allocation5 + $0x280] sm:$0xff]  ;;  %v323_v7 = vcombine.high %v44_v1, %v44_v1 }
  0x44   :  { %1037 = vmatpush3.msra.mxu1 %v158_v15  ;;  %1003 = vmatprep.subr.mxu0 %v141_v16  ;;  %v147_v59 = vld [vmem:[#allocation5 + $0x310] sm:$0xff]  ;;  %v114_v63 = vld [vmem:[#allocation5 + $0x208] sm:$0xff]  ;;  %v161_v3 = vld [vmem:[#allocation5 + $0x380] sm:$0xff] }
  0x45   :  { %1038 = vmatprep.subr.mxu1 %v173_v17  ;;  %1004 = vmatpush3.msra.mxu0 %v125_v18  ;;  %v43_v60 = vld [vmem:[#allocation2 + $0x10] sm:$0xff]  ;;  %v146_v0 = vld [vmem:[#allocation5 + $0x308] sm:$0xff]  ;;  %v113_v5 = vld [vmem:[#allocation5 + $0x200] sm:$0xff] }
  0x46   :  { %1039 = vmatpush3.msra.mxu1 %v157_v19  ;;  %1005 = vmatprep.subr.mxu0 %v140_v20  ;;  %v322_v4 = vcombine.high %v43_v60, %v43_v60  ;;  %v145_v6 = vld [vmem:[#allocation5 + $0x300] sm:$0xff]  ;;  %v208_v8 = vld [vmem:[#allocation5 + $0x4f8] sm:$0xff]  ;;  %v207_v12 = vld [vmem:[#allocation5 + $0x4f0] sm:$0xff] }
  0x47   :  { %1040 = vmatprep.subr.mxu1 %v172_v21  ;;  %1006 = vmatpush3.msra.mxu0 %v124_v22  ;;  %v240_v9 = vld [vmem:[#allocation5 + $0x5f8] sm:$0xff]  ;;  %v239_v13 = vld [vmem:[#allocation5 + $0x5f0] sm:$0xff]  ;;  %v206_v16 = vld [vmem:[#allocation5 + $0x4e8] sm:$0xff] }
  0x48   :  { %1041 = vmatpush3.msra.mxu1 %v156_v23  ;;  %1007 = vmatprep.subr.mxu0 %v139_v24  ;;  %v192_v10 = vld [vmem:[#allocation5 + $0x478] sm:$0xff]  ;;  %v191_v14 = vld [vmem:[#allocation5 + $0x470] sm:$0xff]  ;;  %v238_v17 = vld [vmem:[#allocation5 + $0x5e8] sm:$0xff] }
  0x49   :  { %1042 = vmatprep.subr.mxu1 %v171_v25  ;;  %1008 = vmatpush3.msra.mxu0 %v123_v26  ;;  %v224_v11 = vld [vmem:[#allocation5 + $0x578] sm:$0xff]  ;;  %v223_v15 = vld [vmem:[#allocation5 + $0x570] sm:$0xff]  ;;  %v190_v18 = vld [vmem:[#allocation5 + $0x468] sm:$0xff] }
  0x4a   :  { %1043 = vmatpush3.msra.mxu1 %v155_v27  ;;  %1009 = vmatprep.subr.mxu0 %v138_v28  ;;  %v222_v19 = vld [vmem:[#allocation5 + $0x568] sm:$0xff]  ;;  %v205_v20 = vld [vmem:[#allocation5 + $0x4e0] sm:$0xff]  ;;  %v204_v24 = vld [vmem:[#allocation5 + $0x4d8] sm:$0xff] }
  0x4b   :  { %1044 = vmatprep.subr.mxu1 %v170_v29  ;;  %1010 = vmatpush3.msra.mxu0 %v122_v30  ;;  %v237_v21 = vld [vmem:[#allocation5 + $0x5e0] sm:$0xff]  ;;  %v236_v25 = vld [vmem:[#allocation5 + $0x5d8] sm:$0xff]  ;;  %v203_v28 = vld [vmem:[#allocation5 + $0x4d0] sm:$0xff] }
  0x4c   :  { %1045 = vmatpush3.msra.mxu1 %v154_v31  ;;  %1011 = vmatprep.subr.mxu0 %v137_v32  ;;  %v189_v22 = vld [vmem:[#allocation5 + $0x460] sm:$0xff]  ;;  %v188_v26 = vld [vmem:[#allocation5 + $0x458] sm:$0xff]  ;;  %v235_v29 = vld [vmem:[#allocation5 + $0x5d0] sm:$0xff] }
  0x4d   :  { %1046 = vmatprep.subr.mxu1 %v169_v33  ;;  %1012 = vmatpush3.msra.mxu0 %v121_v34  ;;  %v221_v23 = vld [vmem:[#allocation5 + $0x560] sm:$0xff]  ;;  %v220_v27 = vld [vmem:[#allocation5 + $0x558] sm:$0xff]  ;;  %v187_v30 = vld [vmem:[#allocation5 + $0x450] sm:$0xff] }
  0x4e   :  { %1047 = vmatpush3.msra.mxu1 %v153_v35  ;;  %1013 = vmatprep.subr.mxu0 %v136_v36  ;;  %v219_v31 = vld [vmem:[#allocation5 + $0x550] sm:$0xff]  ;;  %v202_v32 = vld [vmem:[#allocation5 + $0x4c8] sm:$0xff]  ;;  %v201_v36 = vld [vmem:[#allocation5 + $0x4c0] sm:$0xff] }
  0x4f   :  { %1048 = vmatprep.subr.mxu1 %v168_v37  ;;  %1014 = vmatpush3.msra.mxu0 %v120_v38  ;;  %v234_v33 = vld [vmem:[#allocation5 + $0x5c8] sm:$0xff]  ;;  %v233_v37 = vld [vmem:[#allocation5 + $0x5c0] sm:$0xff] }
  0x50   :  { %1049 = vmatpush3.msra.mxu1 %v152_v39  ;;  %1015 = vmatprep.subr.mxu0 %v135_v40  ;;  %v186_v34 = vld [vmem:[#allocation5 + $0x448] sm:$0xff]  ;;  %v185_v38 = vld [vmem:[#allocation5 + $0x440] sm:$0xff]  ;;  %v200_v40 = vld [vmem:[#allocation5 + $0x4b8] sm:$0xff] }
  0x51   :  { %1050 = vmatprep.subr.mxu1 %v167_v41  ;;  %1016 = vmatpush3.msra.mxu0 %v119_v42  ;;  %v218_v35 = vld [vmem:[#allocation5 + $0x548] sm:$0xff]  ;;  %v217_v39 = vld [vmem:[#allocation5 + $0x540] sm:$0xff]  ;;  %v232_v41 = vld [vmem:[#allocation5 + $0x5b8] sm:$0xff] }
  0x52   :  { %1051 = vmatpush3.msra.mxu1 %v151_v43  ;;  %1017 = vmatprep.subr.mxu0 %v134_v44  ;;  %v184_v42 = vld [vmem:[#allocation5 + $0x438] sm:$0xff]  ;;  %v199_v44 = vld [vmem:[#allocation5 + $0x4b0] sm:$0xff] }
  0x53   :  { %1052 = vmatprep.subr.mxu1 %v166_v45  ;;  %1018 = vmatpush3.msra.mxu0 %v118_v46  ;;  %v216_v43 = vld [vmem:[#allocation5 + $0x538] sm:$0xff]  ;;  %v231_v45 = vld [vmem:[#allocation5 + $0x5b0] sm:$0xff] }
  0x54   :  { %1053 = vmatpush3.msra.mxu1 %v150_v47  ;;  %1019 = vmatprep.subr.mxu0 %v133_v48  ;;  %v183_v46 = vld [vmem:[#allocation5 + $0x430] sm:$0xff]  ;;  %v198_v48 = vld [vmem:[#allocation5 + $0x4a8] sm:$0xff] }
  0x55   :  { %1054 = vmatprep.subr.mxu1 %v165_v49  ;;  %1020 = vmatpush3.msra.mxu0 %v117_v50  ;;  %v215_v47 = vld [vmem:[#allocation5 + $0x530] sm:$0xff]  ;;  %v230_v49 = vld [vmem:[#allocation5 + $0x5a8] sm:$0xff] }
  0x56   :  { %1055 = vmatpush3.msra.mxu1 %v149_v51  ;;  %1021 = vmatprep.subr.mxu0 %v132_v52  ;;  %v182_v50 = vld [vmem:[#allocation5 + $0x428] sm:$0xff]  ;;  %v197_v52 = vld [vmem:[#allocation5 + $0x4a0] sm:$0xff] }
  0x57   :  { %1056 = vmatprep.subr.mxu1 %v164_v53  ;;  %1022 = vmatpush3.msra.mxu0 %v116_v54  ;;  %v214_v51 = vld [vmem:[#allocation5 + $0x528] sm:$0xff]  ;;  %v229_v53 = vld [vmem:[#allocation5 + $0x5a0] sm:$0xff] }
  0x58   :  { %1057 = vmatpush3.msra.mxu1 %v148_v55  ;;  %1023 = vmatprep.subr.mxu0 %v131_v56  ;;  %v181_v54 = vld [vmem:[#allocation5 + $0x420] sm:$0xff]  ;;  %v196_v56 = vld [vmem:[#allocation5 + $0x498] sm:$0xff] }
  0x59   :  { %1058 = vmatprep.subr.mxu1 %v163_v57  ;;  %1024 = vmatpush3.msra.mxu0 %v115_v58  ;;  %v213_v55 = vld [vmem:[#allocation5 + $0x520] sm:$0xff]  ;;  %v228_v57 = vld [vmem:[#allocation5 + $0x598] sm:$0xff] }
  0x5a   :  { %1059 = vmatpush3.msra.mxu1 %v147_v59  ;;  %1025 = vmatprep.subr.mxu0 %v130_v61  ;;  %v180_v58 = vld [vmem:[#allocation5 + $0x418] sm:$0xff]  ;;  %v227_v61 = vld [vmem:[#allocation5 + $0x590] sm:$0xff] }
  0x5b   :  { %1060 = vmatprep.subr.mxu1 %v162_v62  ;;  %1026 = vmatpush3.msra.mxu0 %v114_v63  ;;  %v212_v59 = vld [vmem:[#allocation5 + $0x518] sm:$0xff]  ;;  %v179_v62 = vld [vmem:[#allocation5 + $0x410] sm:$0xff] }
  0x5c   :  { %1061 = vmatpush3.msra.mxu1 %v146_v0  ;;  %1027 = vmatprep.subr.mxu0 %v129_v2  ;;  %v211_v63 = vld [vmem:[#allocation5 + $0x510] sm:$0xff]  ;;  %v45_v0 = vld [vmem:[#allocation2 + $0x20] sm:$0xff]  ;;  %v226_v2 = vld [vmem:[#allocation5 + $0x588] sm:$0xff] }
  0x5d   :  { %1062 = vmatprep.subr.mxu1 %v161_v3  ;;  %1028 = vmatpush3.msra.mxu0 %v113_v5  ;;  %v178_v3 = vld [vmem:[#allocation5 + $0x408] sm:$0xff] }
  0x5e   :  { %540 = vmatprep.mubr.f32.mxu0 %v322_v4  ;;  %1063 = vmatpush3.msra.mxu1 %v145_v6  ;;  %v210_v4 = vld [vmem:[#allocation5 + $0x508] sm:$0xff]  ;;  %v193_v6 = vld [vmem:[#allocation5 + $0x480] sm:$0xff] }
  0x5f   :  { %541 = vmatmul.mubr.f32.vlgmr.msra.gmra.mxu0 %v43_v60  ;;  %610 = vmatprep.mubr.f32.mxu1 %v323_v7  ;;  %v195_v60 = vld [vmem:[#allocation5 + $0x490] sm:$0xff]  ;;  %v46_v5 = vld [vmem:[#allocation2 + $0x28] sm:$0xff]  ;;  %v225_v7 = vld [vmem:[#allocation5 + $0x580] sm:$0xff] }
  0x60   :  { %1067 = vmatprep.subr.mxu0 %v208_v8  ;;  %1102 = vmatprep.subr.mxu1 %v240_v9  ;;  %v324_v8 = vcombine.high %v45_v0, %v45_v0  ;;  %v177_v9 = vld [vmem:[#allocation5 + $0x400] sm:$0xff] }
  0x61   :  { %611 = vmatmul.mubr.f32.vlgmr.msra.gmra.mxu1 %v44_v1  ;;  %1068 = vmatpush3.msra.mxu0 %v192_v10  ;;  %v194_v1 = vld [vmem:[#allocation5 + $0x488] sm:$0xff]  ;;  %v209_v10 = vld [vmem:[#allocation5 + $0x500] sm:$0xff] }
  0x62   :  { %1103 = vmatpush3.msra.mxu1 %v224_v11  ;;  %1069 = vmatprep.subr.mxu0 %v207_v12  ;;  %v325_v11 = vcombine.high %v46_v5, %v46_v5  ;;  %v272_v12 = vld [vmem:[#allocation5 + $0x6f8] sm:$0xff] }
  0x63   :  { %1104 = vmatprep.subr.mxu1 %v239_v13  ;;  %1070 = vmatpush3.msra.mxu0 %v191_v14  ;;  %v304_v13 = vld [vmem:[#allocation5 + $0x7f8] sm:$0xff] }
  0x64   :  { %1105 = vmatpush3.msra.mxu1 %v223_v15  ;;  %1071 = vmatprep.subr.mxu0 %v206_v16  ;;  %v256_v14 = vld [vmem:[#allocation5 + $0x678] sm:$0xff]  ;;  %v271_v16 = vld [vmem:[#allocation5 + $0x6f0] sm:$0xff] }
  0x65   :  { %1106 = vmatprep.subr.mxu1 %v238_v17  ;;  %1072 = vmatpush3.msra.mxu0 %v190_v18  ;;  %v288_v15 = vld [vmem:[#allocation5 + $0x778] sm:$0xff]  ;;  %v303_v17 = vld [vmem:[#allocation5 + $0x7f0] sm:$0xff] }
  0x66   :  { %1107 = vmatpush3.msra.mxu1 %v222_v19  ;;  %1073 = vmatprep.subr.mxu0 %v205_v20  ;;  %v255_v18 = vld [vmem:[#allocation5 + $0x670] sm:$0xff]  ;;  %v270_v20 = vld [vmem:[#allocation5 + $0x6e8] sm:$0xff] }
  0x67   :  { %1108 = vmatprep.subr.mxu1 %v237_v21  ;;  %1074 = vmatpush3.msra.mxu0 %v189_v22  ;;  %v287_v19 = vld [vmem:[#allocation5 + $0x770] sm:$0xff]  ;;  %v302_v21 = vld [vmem:[#allocation5 + $0x7e8] sm:$0xff] }
  0x68   :  { %1109 = vmatpush3.msra.mxu1 %v221_v23  ;;  %1075 = vmatprep.subr.mxu0 %v204_v24  ;;  %v254_v22 = vld [vmem:[#allocation5 + $0x668] sm:$0xff]  ;;  %v269_v24 = vld [vmem:[#allocation5 + $0x6e0] sm:$0xff] }
  0x69   :  { %1110 = vmatprep.subr.mxu1 %v236_v25  ;;  %1076 = vmatpush3.msra.mxu0 %v188_v26  ;;  %v286_v23 = vld [vmem:[#allocation5 + $0x768] sm:$0xff]  ;;  %v301_v25 = vld [vmem:[#allocation5 + $0x7e0] sm:$0xff] }
  0x6a   :  { %1111 = vmatpush3.msra.mxu1 %v220_v27  ;;  %1077 = vmatprep.subr.mxu0 %v203_v28  ;;  %v253_v26 = vld [vmem:[#allocation5 + $0x660] sm:$0xff]  ;;  %v268_v28 = vld [vmem:[#allocation5 + $0x6d8] sm:$0xff] }
  0x6b   :  { %1112 = vmatprep.subr.mxu1 %v235_v29  ;;  %1078 = vmatpush3.msra.mxu0 %v187_v30  ;;  %v285_v27 = vld [vmem:[#allocation5 + $0x760] sm:$0xff]  ;;  %v300_v29 = vld [vmem:[#allocation5 + $0x7d8] sm:$0xff] }
  0x6c   :  { %1113 = vmatpush3.msra.mxu1 %v219_v31  ;;  %1079 = vmatprep.subr.mxu0 %v202_v32  ;;  %v252_v30 = vld [vmem:[#allocation5 + $0x658] sm:$0xff]  ;;  %v267_v32 = vld [vmem:[#allocation5 + $0x6d0] sm:$0xff] }
  0x6d   :  { %1114 = vmatprep.subr.mxu1 %v234_v33  ;;  %1080 = vmatpush3.msra.mxu0 %v186_v34  ;;  %v284_v31 = vld [vmem:[#allocation5 + $0x758] sm:$0xff]  ;;  %v299_v33 = vld [vmem:[#allocation5 + $0x7d0] sm:$0xff] }
  0x6e   :  { %1115 = vmatpush3.msra.mxu1 %v218_v35  ;;  %1081 = vmatprep.subr.mxu0 %v201_v36  ;;  %v251_v34 = vld [vmem:[#allocation5 + $0x650] sm:$0xff]  ;;  %v266_v36 = vld [vmem:[#allocation5 + $0x6c8] sm:$0xff] }
  0x6f   :  { %1116 = vmatprep.subr.mxu1 %v233_v37  ;;  %1082 = vmatpush3.msra.mxu0 %v185_v38  ;;  %v283_v35 = vld [vmem:[#allocation5 + $0x750] sm:$0xff]  ;;  %v298_v37 = vld [vmem:[#allocation5 + $0x7c8] sm:$0xff] }
  0x70   :  { %1117 = vmatpush3.msra.mxu1 %v217_v39  ;;  %1083 = vmatprep.subr.mxu0 %v200_v40  ;;  %v250_v38 = vld [vmem:[#allocation5 + $0x648] sm:$0xff]  ;;  %v265_v40 = vld [vmem:[#allocation5 + $0x6c0] sm:$0xff] }
  0x71   :  { %1118 = vmatprep.subr.mxu1 %v232_v41  ;;  %1084 = vmatpush3.msra.mxu0 %v184_v42  ;;  %v282_v39 = vld [vmem:[#allocation5 + $0x748] sm:$0xff]  ;;  %v297_v41 = vld [vmem:[#allocation5 + $0x7c0] sm:$0xff] }
  0x72   :  { %1119 = vmatpush3.msra.mxu1 %v216_v43  ;;  %1085 = vmatprep.subr.mxu0 %v199_v44  ;;  %v249_v42 = vld [vmem:[#allocation5 + $0x640] sm:$0xff]  ;;  %v264_v44 = vld [vmem:[#allocation5 + $0x6b8] sm:$0xff] }
  0x73   :  { %1120 = vmatprep.subr.mxu1 %v231_v45  ;;  %1086 = vmatpush3.msra.mxu0 %v183_v46  ;;  %v281_v43 = vld [vmem:[#allocation5 + $0x740] sm:$0xff]  ;;  %v296_v45 = vld [vmem:[#allocation5 + $0x7b8] sm:$0xff] }
  0x74   :  { %1121 = vmatpush3.msra.mxu1 %v215_v47  ;;  %1087 = vmatprep.subr.mxu0 %v198_v48  ;;  %v248_v46 = vld [vmem:[#allocation5 + $0x638] sm:$0xff]  ;;  %v263_v48 = vld [vmem:[#allocation5 + $0x6b0] sm:$0xff] }
  0x75   :  { %1122 = vmatprep.subr.mxu1 %v230_v49  ;;  %1088 = vmatpush3.msra.mxu0 %v182_v50  ;;  %v280_v47 = vld [vmem:[#allocation5 + $0x738] sm:$0xff]  ;;  %v295_v49 = vld [vmem:[#allocation5 + $0x7b0] sm:$0xff] }
  0x76   :  { %1123 = vmatpush3.msra.mxu1 %v214_v51  ;;  %1089 = vmatprep.subr.mxu0 %v197_v52  ;;  %v247_v50 = vld [vmem:[#allocation5 + $0x630] sm:$0xff]  ;;  %v262_v52 = vld [vmem:[#allocation5 + $0x6a8] sm:$0xff] }
  0x77   :  { %1124 = vmatprep.subr.mxu1 %v229_v53  ;;  %1090 = vmatpush3.msra.mxu0 %v181_v54  ;;  %v279_v51 = vld [vmem:[#allocation5 + $0x730] sm:$0xff]  ;;  %v294_v53 = vld [vmem:[#allocation5 + $0x7a8] sm:$0xff] }
  0x78   :  { %1125 = vmatpush3.msra.mxu1 %v213_v55  ;;  %1091 = vmatprep.subr.mxu0 %v196_v56  ;;  %v246_v54 = vld [vmem:[#allocation5 + $0x628] sm:$0xff]  ;;  %v261_v56 = vld [vmem:[#allocation5 + $0x6a0] sm:$0xff] }
  0x79   :  { %1126 = vmatprep.subr.mxu1 %v228_v57  ;;  %1092 = vmatpush3.msra.mxu0 %v180_v58  ;;  %v278_v55 = vld [vmem:[#allocation5 + $0x728] sm:$0xff]  ;;  %v293_v57 = vld [vmem:[#allocation5 + $0x7a0] sm:$0xff] }
  0x7a   :  { %1127 = vmatpush3.msra.mxu1 %v212_v59  ;;  %1093 = vmatprep.subr.mxu0 %v195_v60  ;;  %v245_v58 = vld [vmem:[#allocation5 + $0x620] sm:$0xff]  ;;  %v260_v60 = vld [vmem:[#allocation5 + $0x698] sm:$0xff] }
  0x7b   :  { %1128 = vmatprep.subr.mxu1 %v227_v61  ;;  %1094 = vmatpush3.msra.mxu0 %v179_v62  ;;  %v277_v59 = vld [vmem:[#allocation5 + $0x720] sm:$0xff]  ;;  %v292_v61 = vld [vmem:[#allocation5 + $0x798] sm:$0xff] }
  0x7c   :  { %1129 = vmatpush3.msra.mxu1 %v211_v63  ;;  %1095 = vmatprep.subr.mxu0 %v194_v1  ;;  %v244_v62 = vld [vmem:[#allocation5 + $0x618] sm:$0xff]  ;;  %v291_v1 = vld [vmem:[#allocation5 + $0x790] sm:$0xff] }
  0x7d   :  { %1130 = vmatprep.subr.mxu1 %v226_v2  ;;  %1096 = vmatpush3.msra.mxu0 %v178_v3  ;;  %v276_v63 = vld [vmem:[#allocation5 + $0x718] sm:$0xff]  ;;  %v243_v2 = vld [vmem:[#allocation5 + $0x610] sm:$0xff] }
  0x7e   :  { %1131 = vmatpush3.msra.mxu1 %v210_v4  ;;  %1097 = vmatprep.subr.mxu0 %v193_v6  ;;  %v275_v3 = vld [vmem:[#allocation5 + $0x710] sm:$0xff]  ;;  %v290_v6 = vld [vmem:[#allocation5 + $0x788] sm:$0xff] }
  0x7f   :  { %1132 = vmatprep.subr.mxu1 %v225_v7  ;;  %1098 = vmatpush3.msra.mxu0 %v177_v9  ;;  %v47_v4 = vld [vmem:[#allocation2 + $0x30] sm:$0xff]  ;;  %v48_v7 = vld [vmem:[#allocation2 + $0x38] sm:$0xff]  ;;  %v274_v9 = vld [vmem:[#allocation5 + $0x708] sm:$0xff] }
  0x80   :  { %680 = vmatprep.mubr.f32.mxu0 %v324_v8  ;;  %1133 = vmatpush3.msra.mxu1 %v209_v10  ;;  %v242_v8 = vld [vmem:[#allocation5 + $0x608] sm:$0xff]  ;;  %v257_v10 = vld [vmem:[#allocation5 + $0x680] sm:$0xff] }
  0x81   :  { %681 = vmatmul.mubr.f32.vlgmr.msra.gmra.mxu0 %v45_v0  ;;  %750 = vmatprep.mubr.f32.mxu1 %v325_v11  ;;  %v259_v0 = vld [vmem:[#allocation5 + $0x690] sm:$0xff]  ;;  %v289_v11 = vld [vmem:[#allocation5 + $0x780] sm:$0xff] }
  0x82   :  { %1137 = vmatprep.subr.mxu0 %v272_v12  ;;  %1172 = vmatprep.subr.mxu1 %v304_v13  ;;  %v326_v12 = vcombine.high %v47_v4, %v47_v4  ;;  %v241_v13 = vld [vmem:[#allocation5 + $0x600] sm:$0xff] }
  0x83   :  { %751 = vmatmul.mubr.f32.vlgmr.msra.gmra.mxu1 %v46_v5  ;;  %1138 = vmatpush3.msra.mxu0 %v256_v14  ;;  %v258_v5 = vld [vmem:[#allocation5 + $0x688] sm:$0xff]  ;;  %v327_v14 = vcombine.high %v48_v7, %v48_v7 }
  0x84   :  { %1173 = vmatpush3.msra.mxu1 %v288_v15  ;;  %1139 = vmatprep.subr.mxu0 %v271_v16  ;;  %v273_v15 = vld [vmem:[#allocation5 + $0x700] sm:$0xff] }
  0x85   :  { %1174 = vmatprep.subr.mxu1 %v303_v17  ;;  %1140 = vmatpush3.msra.mxu0 %v255_v18 }
  0x86   :  { %1175 = vmatpush3.msra.mxu1 %v287_v19  ;;  %1141 = vmatprep.subr.mxu0 %v270_v20 }
  0x87   :  { %1176 = vmatprep.subr.mxu1 %v302_v21  ;;  %1142 = vmatpush3.msra.mxu0 %v254_v22  ;;  %v926_v21 = vld [vmem:[%s1329_s2] ss:$0 sm:$0xff]  ;;  %s1294_s2 = smov [#allocation7]  }
  0x88   :  { %1177 = vmatpush3.msra.mxu1 %v286_v23  ;;  %1143 = vmatprep.subr.mxu0 %v269_v24  ;;  %s916_s24 = sshll.u32 %s1294_s2, 4  ;;  %s917_s24 = int_to_ptr.vmem [resolvable:$true] %s916_s24 }
  0x89   :  { %1178 = vmatprep.subr.mxu1 %v301_v25  ;;  %1144 = vmatpush3.msra.mxu0 %v253_v26  ;;  %s1264_s25 = scalar_lea.vmem %s917_s24, 64  ;;  %p1269_p11 = scmp.lt.s32.totalorder %s917_s24, %s917_s24 }
  0x8a   :  { %1179 = vmatpush3.msra.mxu1 %v285_v27  ;;  %1145 = vmatprep.subr.mxu0 %v268_v28  ;;  %p1265_p10 = scmp.ne.s32.totalorder %s917_s24, %s1264_s25  ;;  %p1270_p12 = scmp.lt.s32.totalorder %s1264_s25, %s1264_s25 }
  0x8b   :  { %1180 = vmatprep.subr.mxu1 %v300_v29  ;;  %1146 = vmatpush3.msra.mxu0 %v252_v30 }
  0x8c   :  { %1181 = vmatpush3.msra.mxu1 %v284_v31  ;;  %1147 = vmatprep.subr.mxu0 %v267_v32  ;;  %p1271_p13 = por %p1270_p12, %p1269_p11 }
  0x8d   :  { %1182 = vmatprep.subr.mxu1 %v299_v33  ;;  %1148 = vmatpush3.msra.mxu0 %v251_v34 }
  0x8e   :  { %1183 = vmatpush3.msra.mxu1 %v283_v35  ;;  %1149 = vmatprep.subr.mxu0 %v266_v36  ;;  %p1272_p0 = pnand %p1271_p13, %p1265_p10 }
  0x8f   :  { %1184 = vmatprep.subr.mxu1 %v298_v37  ;;  %1150 = vmatpush3.msra.mxu0 %v250_v38 }
  0x90   :  { %1185 = vmatpush3.msra.mxu1 %v282_v39  ;;  %1151 = vmatprep.subr.mxu0 %v265_v40 }
  0x91   :  { %1186 = vmatprep.subr.mxu1 %v297_v41  ;;  %1152 = vmatpush3.msra.mxu0 %v249_v42 }
  0x92   :  { %1187 = vmatpush3.msra.mxu1 %v281_v43  ;;  %1153 = vmatprep.subr.mxu0 %v264_v44 }
  0x93   :  { %1188 = vmatprep.subr.mxu1 %v296_v45  ;;  %1154 = vmatpush3.msra.mxu0 %v248_v46 }
  0x94   :  { %1189 = vmatpush3.msra.mxu1 %v280_v47  ;;  %1155 = vmatprep.subr.mxu0 %v263_v48 }
  0x95   :  { %1190 = vmatprep.subr.mxu1 %v295_v49  ;;  %1156 = vmatpush3.msra.mxu0 %v247_v50 }
  0x96   :  { %1191 = vmatpush3.msra.mxu1 %v279_v51  ;;  %1157 = vmatprep.subr.mxu0 %v262_v52 }
  0x97   :  { %1192 = vmatprep.subr.mxu1 %v294_v53  ;;  %1158 = vmatpush3.msra.mxu0 %v246_v54 }
  0x98   :  { %1193 = vmatpush3.msra.mxu1 %v278_v55  ;;  %1159 = vmatprep.subr.mxu0 %v261_v56 }
  0x99   :  { %1194 = vmatprep.subr.mxu1 %v293_v57  ;;  %1160 = vmatpush3.msra.mxu0 %v245_v58 }
  0x9a   :  { %1195 = vmatpush3.msra.mxu1 %v277_v59  ;;  %1161 = vmatprep.subr.mxu0 %v260_v60 }
  0x9b   :  { %1196 = vmatprep.subr.mxu1 %v292_v61  ;;  %1162 = vmatpush3.msra.mxu0 %v244_v62 }
  0x9c   :  { %1197 = vmatpush3.msra.mxu1 %v276_v63  ;;  %1163 = vmatprep.subr.mxu0 %v259_v0 }
  0x9d   :  { %1198 = vmatprep.subr.mxu1 %v291_v1  ;;  %1164 = vmatpush3.msra.mxu0 %v243_v2 }
  0x9e   :  { %1199 = vmatpush3.msra.mxu1 %v275_v3  ;;  %1165 = vmatprep.subr.mxu0 %v258_v5 }
  0x9f   :  { %1200 = vmatprep.subr.mxu1 %v290_v6  ;;  %1166 = vmatpush3.msra.mxu0 %v242_v8 }
  0xa0   :  { %1201 = vmatpush3.msra.mxu1 %v274_v9  ;;  %1167 = vmatprep.subr.mxu0 %v257_v10 }
  0xa1   :  { %1202 = vmatprep.subr.mxu1 %v289_v11  ;;  %1168 = vmatpush3.msra.mxu0 %v241_v13 }
  0xa2   :  { %820 = vmatprep.mubr.f32.mxu0 %v326_v12  ;;  %1203 = vmatpush3.msra.mxu1 %v273_v15 }
  0xa3   :  { %890 = vmatprep.mubr.f32.mxu1 %v327_v14  ;;  %821 = vmatmul.mubr.f32.vlgmr.msra.gmra.mxu0 %v47_v4 }
  0xa4   :  { %891 = vmatmul.mubr.f32.vlgmr.msra.gmra.mxu1 %v48_v7 }
  0xfd   :  { %v959_v16 = vpop.f32.mrf.mxu0 }
  0xff   :  { %v994_v17 = vpop.f32.mrf.mxu1  ;;  %v960_v18 = vpop.f32.mrf.mxu0 }
 0x100   :  { %v961_v20 = vadd.f32 %v960_v18, %v959_v16 }
 0x101   :  { %v995_v22 = vpop.f32.mrf.mxu1 }
 0x102   :  { %v403_v25 = vadd.f32 %v961_v20, %v926_v21  ;;  %v996_v26 = vadd.f32 %v995_v22, %v994_v17 }
 0x104   :  { %v473_v30 = vadd.f32 %v996_v26, %v403_v25 }
 0x11f   :  { %v1029_v19 = vpop.f32.mrf.mxu0 }
 0x121   :  { %v1064_v23 = vpop.f32.mrf.mxu1  ;;  %v1030_v24 = vpop.f32.mrf.mxu0 }
 0x122   :  { %v1031_v28 = vadd.f32 %v1030_v24, %v1029_v19 }
 0x123   :  { %v1065_v29 = vpop.f32.mrf.mxu1 }
 0x124   :  { %v543_v33 = vadd.f32 %v1031_v28, %v473_v30  ;;  %v1066_v34 = vadd.f32 %v1065_v29, %v1064_v23 }
 0x126   :  { %v613_v37 = vadd.f32 %v1066_v34, %v543_v33 }
 0x141   :  { %v1099_v27 = vpop.f32.mrf.mxu0 }
 0x143   :  { %v1134_v31 = vpop.f32.mrf.mxu1  ;;  %v1100_v32 = vpop.f32.mrf.mxu0 }
 0x144   :  { %v1101_v35 = vadd.f32 %v1100_v32, %v1099_v27 }
 0x145   :  { %v1135_v36 = vpop.f32.mrf.mxu1 }
 0x146   :  { %v683_v38 = vadd.f32 %v1101_v35, %v613_v37  ;;  %v1136_v39 = vadd.f32 %v1135_v36, %v1134_v31 }
 0x148   :  { %v753_v44 = vadd.f32 %v1136_v39, %v683_v38 }
 0x163   :  { %v1169_v40 = vpop.f32.mrf.mxu0 }
 0x164   :  { %v1204_v41 = vpop.f32.mrf.mxu1 }
 0x165   :  { %v1170_v42 = vpop.f32.mrf.mxu0 }
 0x166   :  { %v1205_v43 = vpop.f32.mrf.mxu1  ;;  %v1171_v45 = vadd.f32 %v1170_v42, %v1169_v40 }
 0x167   :  { %v1206_v47 = vadd.f32 %v1205_v43, %v1204_v41 }
 0x168   :  { %v823_v46 = vadd.f32 %v1171_v45, %v753_v44 }
 0x16a   :  { %v893_v48 = vadd.f32 %v1206_v47, %v823_v46 }
 0x16c   :  { %v897_v49 = vsel %vm896_vm0, %v893_v48, -inf }
 0x16d   :  { %898 = vmax.xlane.f32.xlu0 %v897_v49 }
 0x1f6   :  { %v899_v50 = vpop.xlane.xlu0 %898 }
 0x1f7   :  { %v900_v51 = vsub.f32 %v893_v48, %v899_v50 }
 0x1f9   :  { %v901_v52 = vmul.f32 1.442695, %v900_v51 }
 0x1fb   :  { %1220 = vpow2.f32 %v901_v52 }
 0x208   :  { %v1221_v53 = vpop.eup %1220 }
 0x209   :  { %v903_v54 = vsel %vm896_vm0, %v1221_v53, 0.0 }
 0x20a   :  { %904 = vadd.xlane.f32.xlu0 %v903_v54 }
 0x293   :  { %v905_v55 = vpop.xlane.xlu0 %904 }
 0x294   :  { %1222 = vlog2.f32 %v905_v55 }
 0x2a1   :  { %v1223_v56 = vpop.eup %1222 }
 0x2a2   :  { %v907_v57 = vmul.f32 0.6931472, %v1223_v56 }
 0x2a4   :  { %v908_v58 = vsub.f32 %v900_v51, %v907_v57 }
 0x2a6   :  { %909 = vst [vmem:[#allocation7] sm:$0xf] %v908_v58 }
 0x2a7   :  { %1275 = shalt.err (!%p1272_p0)
}
 0x2a8   :  { %919 = dma.vmem_to_hbm [thread:$0]  %s917_s24, 64, %s1330_s3, [#allocation4]  }
 0x2a9   :  { %1288 = dma.done.wait [#allocation4], 64  }
 0x2aa   :  { %1289 = vsyncadd [#allocation4], 4294967232 }
 0x2ab   :  { %923 = vsyncpa [#allocation3], 1 }
 0x2ac   :  { %924 = vsyncpa [#allocation6], 1 }
 0x2ad   :  { %925 = vsyncpa [#allocation4], 1 }

</bundles_post_ra>
